<compile_context>
chip_gen: v7x
topology: tpu7x:2x2x1
jax: 0.10.0
libtpu: 0.0.40
codegen_flags: <defaults>
</compile_context>

<pallas_src>
import jax
import jax.numpy as jnp
from jax.experimental import pallas as pl
from jax.experimental.pallas import tpu as pltpu


# ---------------------------------------------------------------------------
# Generic valid (no padding), stride-1, kh x kw convolution kernel.
# ---------------------------------------------------------------------------
def _make_conv_kernel(kh, kw, th, Wo, Cin, Cout):
    """Kernel for one (batch n, output-row-block r) grid cell.

    refs:
      x_ref : (Hin, Win, Cin)     whole pre-padded image of batch n (VMEM)
      w_ref : (kh*kw, Cin, Cout)  weights, tap-major
      b_ref : (1, Cout)           bias
      o_ref : (th*Wo, Cout)       flat output rows of this row block
    """

    def kernel(x_ref, w_ref, b_ref, o_ref):
        r0 = pl.multiple_of(pl.program_id(1) * th, th)
        acc = jnp.zeros((th * Wo, Cout), jnp.float32)
        for ky in range(kh):                     # static unrolled taps
            for kx in range(kw):
                # Contiguous window (no strided slicing).  The reshape only
                # merges leading dims (lane dim Cin preserved); with Wo a
                # multiple of 8 this is a pure vreg re-index, not a relayout.
                win = x_ref[pl.ds(r0 + ky, th), pl.ds(kx, Wo), :]
                win = win.reshape(th * Wo, Cin).astype(jnp.float32)
                w = w_ref[ky * kw + kx].astype(jnp.float32)       # (Cin, Cout)
                acc = acc + jnp.dot(win, w,
                                    preferred_element_type=jnp.float32)
        acc = acc + b_ref[...].astype(jnp.float32)                # (1, Cout)
        o_ref[...] = acc.astype(o_ref.dtype)

    return kernel


def _pick_row_tile(Ho, Wo, Cout, budget_bytes=512 * 1024):
    """Largest multiple-of-8 divisor of Ho whose f32 accumulator tile fits the
    budget (keeps vreg/VMEM pressure bounded; sized with v7x's 64 MiB VMEM in
    mind).  Falls back to the full height, which is always a legal block."""
    cap = max(1, budget_bytes // max(1, Wo * Cout * 4))
    th = None
    for cand in range(8, Ho + 1, 8):
        if Ho % cand == 0 and cand <= cap:
            th = cand
    return th if th is not None else Ho


def _conv_s1_valid(x, w, b):
    """Valid stride-1 conv in NHWC.  x: (N,Hin,Win,Cin), w: (kh,kw,Cin,Cout),
    b: (Cout,).  Returns (N, Ho, Wo, Cout), Ho = Hin-kh+1, Wo = Win-kw+1."""
    N, Hin, Win, Cin = x.shape
    kh, kw, _, Cout = w.shape
    Ho, Wo = Hin - kh + 1, Win - kw + 1
    th = _pick_row_tile(Ho, Wo, Cout)
    grid = (N, Ho // th)

    kernel = _make_conv_kernel(kh, kw, th, Wo, Cin, Cout)
    out = pl.pallas_call(
        kernel,
        out_shape=jax.ShapeDtypeStruct((N, Ho * Wo, Cout), x.dtype),
        grid=grid,
        in_specs=[
            # Whole padded image of batch n; block index depends only on n so
            # the DMA is skipped while r (innermost grid axis) varies.
            pl.BlockSpec((None, Hin, Win, Cin), lambda n, r: (n, 0, 0, 0)),
            pl.BlockSpec((kh * kw, Cin, Cout), lambda n, r: (0, 0, 0)),
            pl.BlockSpec((1, Cout), lambda n, r: (0, 0)),
        ],
        out_specs=pl.BlockSpec((None, th * Wo, Cout), lambda n, r: (n, r, 0)),
        compiler_params=pltpu.CompilerParams(
            dimension_semantics=("parallel", "parallel"),
            vmem_limit_bytes=32 * 1024 * 1024,
        ),
    )(x, w.reshape(kh * kw, Cin, Cout), b.reshape(1, Cout))
    # HBM bytes of (N, Ho*Wo, Cout) are exactly the NHWC tensor; free reshape.
    return out.reshape(N, Ho, Wo, Cout)


# ---------------------------------------------------------------------------
# Stride-2 conv0 via 2x2 space-to-depth (wrapper-side, cheap: Cin is tiny).
# ---------------------------------------------------------------------------
def _space_to_depth2(x):
    N, H, W, C = x.shape                       # H, W even
    x = x.reshape(N, H // 2, 2, W // 2, 2, C)
    x = jnp.transpose(x, (0, 1, 3, 2, 4, 5))
    return x.reshape(N, H // 2, W // 2, 4 * C)


def _space_to_depth_weights(w):
    """(3,3,Cin,Cout) stride-2 weights -> (2,2,4*Cin,Cout) stride-1 weights
    acting on the space-to-depth input (missing 4th taps are zero)."""
    _, _, Cin, Cout = w.shape
    wp = jnp.pad(w, ((0, 1), (0, 1), (0, 0), (0, 0)))        # (4,4,Cin,Cout)
    wp = wp.reshape(2, 2, 2, 2, Cin, Cout)                   # (dy,di,dx,dj,..)
    wp = jnp.transpose(wp, (0, 2, 1, 3, 4, 5))               # (dy,dx,di,dj,..)
    return wp.reshape(2, 2, 4 * Cin, Cout)


# ---------------------------------------------------------------------------
# Stem forward
# ---------------------------------------------------------------------------
def stem_forward(x_nchw, params):
    x = jnp.transpose(x_nchw, (0, 2, 3, 1))                  # NCHW -> NHWC
    N, H, W, _ = x.shape

    # conv0: pad=1 (+parity pad so H,W become even) -> s2d -> 2x2 valid conv.
    ph, pw = (H + 2) % 2, (W + 2) % 2
    x0 = jnp.pad(x, ((0, 0), (1, 1 + ph), (1, 1 + pw), (0, 0)))
    y0 = _conv_s1_valid(_space_to_depth2(x0),
                        _space_to_depth_weights(params["w0"]),
                        params["b0"])

    # conv1: pad=1 -> 3x3 valid conv.
    # TODO(synk): fuse conv0+conv1 into one pallas_call (keep y0 + halo in
    # VMEM scratch) to drop this HBM round trip of the intermediate.
    y0p = jnp.pad(y0, ((0, 0), (1, 1), (1, 1), (0, 0)))
    y1 = _conv_s1_valid(y0p, params["w1"], params["b1"])

    return jnp.transpose(y1, (0, 3, 1, 2))                   # NHWC -> NCHW


def init_params(key, in_channels, out_channels):
    # Deterministic synthetic init.  PyTorch Conv2d weight is (Cout,Cin,3,3);
    # stored here directly as (3,3,Cin,Cout) (same cross-correlation math).
    k0, k1, k2, k3 = jax.random.split(key, 4)
    w0 = jax.random.normal(k0, (3, 3, in_channels, out_channels), jnp.float32) * 0.1
    b0 = jax.random.normal(k1, (out_channels,), jnp.float32) * 0.1
    w1 = jax.random.normal(k2, (3, 3, out_channels, out_channels), jnp.float32) * 0.1
    b1 = jax.random.normal(k3, (out_channels,), jnp.float32) * 0.1
    return {"w0": w0, "b0": b0, "w1": w1, "b1": b1}


def _reference(x_nchw, params):
    # Pure-XLA reference (cross-correlation == PyTorch Conv2d) for sanity check.
    def conv(x, w, b, stride):
        y = jax.lax.conv_general_dilated(
            x, w, window_strides=(stride, stride), padding=((1, 1), (1, 1)),
            dimension_numbers=("NHWC", "HWIO", "NHWC"))
        return y + b[None, None, None, :]

    x = jnp.transpose(x_nchw, (0, 2, 3, 1))
    y = conv(x, params["w0"], params["b0"], 2)
    y = conv(y, params["w1"], params["b1"], 1)
    return jnp.transpose(y, (0, 3, 1, 2))


if __name__ == "__main__":
    key = jax.random.PRNGKey(0)
    kx, kp = jax.random.split(key)
    N, Cin, H, W = 2, 4, 16, 16
    Cout = 32

    x = jax.random.normal(kx, (N, Cin, H, W), jnp.float32)
    params = init_params(kp, Cin, Cout)

    out = jax.block_until_ready(stem_forward(x, params))
    assert out.shape == (N, Cout, H // 2, W // 2), out.shape

    ref = jax.block_until_ready(_reference(x, params))
    assert jnp.allclose(out, ref, rtol=1e-4, atol=1e-4), "mismatch vs XLA reference"

    print("KERNEL_OK")
</pallas_src>

<mosaic_0001>
module attributes {stable_mosaic.version = 11 : i64} {
  func.func @kernel(%arg0: i32, %arg1: i32, %arg2: memref<1x9x9x16xf32, #tpu.memory_space<vmem>>, %arg3: memref<4x16x32xf32, #tpu.memory_space<vmem>>, %arg4: memref<1x32xf32, #tpu.memory_space<vmem>>, %arg5: memref<1x64x32xf32, #tpu.memory_space<vmem>>) attributes {dimension_semantics = [#tpu.dimension_semantics<parallel>, #tpu.dimension_semantics<parallel>], iteration_bounds = array<i64: 2, 1>, scalar_prefetch = 0 : i64, scratch_operands = 0 : i64, tpu.core_type = #tpu.core_type<tc>, window_params = [{transform_indices = @transform_0, window_bounds = array<i64: 1, 9, 9, 16>}, {pipeline_mode = #tpu.pipeline_mode<synchronous>, transform_indices = @transform_1, window_bounds = array<i64: 4, 16, 32>}, {pipeline_mode = #tpu.pipeline_mode<synchronous>, transform_indices = @transform_2, window_bounds = array<i64: 1, 32>}, {transform_indices = @transform_3, window_bounds = array<i64: 1, 64, 32>}]} {
    %c8_i32 = arith.constant 8 : i32
    %0 = arith.muli %arg1, %c8_i32 : i32
    %1 = tpu.assume_multiple %0, 8 : i32
    %cst = arith.constant 0.000000e+00 : f32
    %2 = vector.broadcast %cst : f32 to vector<64x32xf32>
    %c0_i32 = arith.constant 0 : i32
    %3 = arith.addi %1, %c0_i32 : i32
    %c0 = arith.constant 0 : index
    %4 = arith.index_cast %3 : i32 to index
    %c0_0 = arith.constant 0 : index
    %c0_1 = arith.constant 0 : index
    %5 = vector.load %arg2[%c0, %4, %c0_0, %c0_1] : memref<1x9x9x16xf32, #tpu.memory_space<vmem>>, vector<1x8x8x16xf32>
    %6 = vector.shape_cast %5 : vector<1x8x8x16xf32> to vector<8x8x16xf32>
    %7 = vector.shape_cast %6 : vector<8x8x16xf32> to vector<64x16xf32>
    %c0_2 = arith.constant 0 : index
    %c0_3 = arith.constant 0 : index
    %c0_4 = arith.constant 0 : index
    %8 = vector.load %arg3[%c0_2, %c0_3, %c0_4] : memref<4x16x32xf32, #tpu.memory_space<vmem>>, vector<1x16x32xf32>
    %9 = vector.shape_cast %8 : vector<1x16x32xf32> to vector<16x32xf32>
    %cst_5 = arith.constant dense<0.000000e+00> : vector<64x32xf32>
    %10 = tpu.matmul %7, %9, %cst_5 {dimension_numbers = #tpu.dot_dimension_numbers<[1], [0], [0], [1], [0, 0, 1, 1], [], []>} : vector<64x16xf32>, vector<16x32xf32>, vector<64x32xf32> -> vector<64x32xf32>
    %11 = arith.addf %2, %10 : vector<64x32xf32>
    %c0_i32_6 = arith.constant 0 : i32
    %12 = arith.addi %1, %c0_i32_6 : i32
    %c0_7 = arith.constant 0 : index
    %13 = arith.index_cast %12 : i32 to index
    %c1 = arith.constant 1 : index
    %c0_8 = arith.constant 0 : index
    %14 = vector.load %arg2[%c0_7, %13, %c1, %c0_8] : memref<1x9x9x16xf32, #tpu.memory_space<vmem>>, vector<1x8x8x16xf32>
    %15 = vector.shape_cast %14 : vector<1x8x8x16xf32> to vector<8x8x16xf32>
    %16 = vector.shape_cast %15 : vector<8x8x16xf32> to vector<64x16xf32>
    %c1_9 = arith.constant 1 : index
    %c0_10 = arith.constant 0 : index
    %c0_11 = arith.constant 0 : index
    %17 = vector.load %arg3[%c1_9, %c0_10, %c0_11] : memref<4x16x32xf32, #tpu.memory_space<vmem>>, vector<1x16x32xf32>
    %18 = vector.shape_cast %17 : vector<1x16x32xf32> to vector<16x32xf32>
    %cst_12 = arith.constant dense<0.000000e+00> : vector<64x32xf32>
    %19 = tpu.matmul %16, %18, %cst_12 {dimension_numbers = #tpu.dot_dimension_numbers<[1], [0], [0], [1], [0, 0, 1, 1], [], []>} : vector<64x16xf32>, vector<16x32xf32>, vector<64x32xf32> -> vector<64x32xf32>
    %20 = arith.addf %11, %19 : vector<64x32xf32>
    %c1_i32 = arith.constant 1 : i32
    %21 = arith.addi %1, %c1_i32 : i32
    %c0_13 = arith.constant 0 : index
    %22 = arith.index_cast %21 : i32 to index
    %c0_14 = arith.constant 0 : index
    %c0_15 = arith.constant 0 : index
    %23 = vector.load %arg2[%c0_13, %22, %c0_14, %c0_15] : memref<1x9x9x16xf32, #tpu.memory_space<vmem>>, vector<1x8x8x16xf32>
    %24 = vector.shape_cast %23 : vector<1x8x8x16xf32> to vector<8x8x16xf32>
    %25 = vector.shape_cast %24 : vector<8x8x16xf32> to vector<64x16xf32>
    %c2 = arith.constant 2 : index
    %c0_16 = arith.constant 0 : index
    %c0_17 = arith.constant 0 : index
    %26 = vector.load %arg3[%c2, %c0_16, %c0_17] : memref<4x16x32xf32, #tpu.memory_space<vmem>>, vector<1x16x32xf32>
    %27 = vector.shape_cast %26 : vector<1x16x32xf32> to vector<16x32xf32>
    %cst_18 = arith.constant dense<0.000000e+00> : vector<64x32xf32>
    %28 = tpu.matmul %25, %27, %cst_18 {dimension_numbers = #tpu.dot_dimension_numbers<[1], [0], [0], [1], [0, 0, 1, 1], [], []>} : vector<64x16xf32>, vector<16x32xf32>, vector<64x32xf32> -> vector<64x32xf32>
    %29 = arith.addf %20, %28 : vector<64x32xf32>
    %c1_i32_19 = arith.constant 1 : i32
    %30 = arith.addi %1, %c1_i32_19 : i32
    %c0_20 = arith.constant 0 : index
    %31 = arith.index_cast %30 : i32 to index
    %c1_21 = arith.constant 1 : index
    %c0_22 = arith.constant 0 : index
    %32 = vector.load %arg2[%c0_20, %31, %c1_21, %c0_22] : memref<1x9x9x16xf32, #tpu.memory_space<vmem>>, vector<1x8x8x16xf32>
    %33 = vector.shape_cast %32 : vector<1x8x8x16xf32> to vector<8x8x16xf32>
    %34 = vector.shape_cast %33 : vector<8x8x16xf32> to vector<64x16xf32>
    %c3 = arith.constant 3 : index
    %c0_23 = arith.constant 0 : index
    %c0_24 = arith.constant 0 : index
    %35 = vector.load %arg3[%c3, %c0_23, %c0_24] : memref<4x16x32xf32, #tpu.memory_space<vmem>>, vector<1x16x32xf32>
    %36 = vector.shape_cast %35 : vector<1x16x32xf32> to vector<16x32xf32>
    %cst_25 = arith.constant dense<0.000000e+00> : vector<64x32xf32>
    %37 = tpu.matmul %34, %36, %cst_25 {dimension_numbers = #tpu.dot_dimension_numbers<[1], [0], [0], [1], [0, 0, 1, 1], [], []>} : vector<64x16xf32>, vector<16x32xf32>, vector<64x32xf32> -> vector<64x32xf32>
    %38 = arith.addf %29, %37 : vector<64x32xf32>
    %c0_26 = arith.constant 0 : index
    %c0_27 = arith.constant 0 : index
    %39 = vector.load %arg4[%c0_26, %c0_27] : memref<1x32xf32, #tpu.memory_space<vmem>>, vector<1x32xf32>
    %40 = vector.broadcast %39 : vector<1x32xf32> to vector<64x32xf32>
    %41 = arith.addf %38, %40 : vector<64x32xf32>
    %c0_28 = arith.constant 0 : index
    %c0_29 = arith.constant 0 : index
    %c0_30 = arith.constant 0 : index
    %42 = vector.load %arg5[%c0_28, %c0_29, %c0_30] : memref<1x64x32xf32, #tpu.memory_space<vmem>>, vector<1x64x32xf32>
    %43 = vector.shape_cast %42 : vector<1x64x32xf32> to vector<64x32xf32>
    %44 = vector.shape_cast %41 : vector<64x32xf32> to vector<1x64x32xf32>
    tpu.vector_store %arg5[%c0_28, %c0_29, %c0_30], %44 {strides = array<i32>} : memref<1x64x32xf32, #tpu.memory_space<vmem>>, vector<1x64x32xf32>,
    return
  }
  func.func @transform_0(%arg0: i32, %arg1: i32) -> (i32, i32, i32, i32) {
    %c0_i32 = arith.constant 0 : i32
    %c0_i32_0 = arith.constant 0 : i32
    %c0_i32_1 = arith.constant 0 : i32
    %c0_i32_2 = arith.constant 0 : i32
    return %arg0, %c0_i32, %c0_i32_0, %c0_i32_1 : i32, i32, i32, i32
  }
  func.func @transform_1(%arg0: i32, %arg1: i32) -> (i32, i32, i32) {
    %c0_i32 = arith.constant 0 : i32
    %c0_i32_0 = arith.constant 0 : i32
    %c0_i32_1 = arith.constant 0 : i32
    %c0_i32_2 = arith.constant 0 : i32
    return %c0_i32, %c0_i32_0, %c0_i32_1 : i32, i32, i32
  }
  func.func @transform_2(%arg0: i32, %arg1: i32) -> (i32, i32) {
    %c0_i32 = arith.constant 0 : i32
    %c0_i32_0 = arith.constant 0 : i32
    %c0_i32_1 = arith.constant 0 : i32
    return %c0_i32, %c0_i32_0 : i32, i32
  }
  func.func @transform_3(%arg0: i32, %arg1: i32) -> (i32, i32, i32) {
    %c0_i32 = arith.constant 0 : i32
    %c0_i32_0 = arith.constant 0 : i32
    return %arg0, %arg1, %c0_i32 : i32, i32, i32
  }
}

</mosaic_0001>

<bundles_post_ra>
// kernel: tpu_custom_call.1
= control target key start
LH: loop header
LB: loop body
LE: loop exit
PB: predicated region body
PF: predicated region fallthrough
CT: control target
= control target key end

     0   :  { %s1166_s12 = smov 0   ;;  %s1168_s13 = smov 0   ;;  %s1300_s0 = inlined_call_operand.vmem [shape: f32[2,9,9,16], index: 0, kind: input, shape index: {}]   ;;  %s1301_s1 = inlined_call_operand.vmem [shape: f32[4,16,32], index: 1, kind: input, shape index: {}]   ;;  %s1302_s2 = inlined_call_operand.vmem [shape: f32[1,32], index: 2, kind: input, shape index: {}]   ;;  %s1303_s3 = inlined_call_operand.vmem [shape: f32[2,64,32], index: 3, kind: output, shape index: {}]  }
   0x1   :  { %s1170_s14 = smov 0  }
   0x2 LB: > { %s25_s15 = sadd.s32 1, %s1140_s13  ;;  %p891_p0 = scmp.ge.s32.totalorder %s1144_s14, 1  ;;  %s1144_s14 = sphi %s1170_s14, %s13_s14   ;;  %s1140_s13 = sphi %s1168_s13, %s1305_s13   ;;  %s1136_s12 = sphi %s1166_s12, %s1304_s12  }
   0x3   : > { %p27_p1 = scmp.ge.s32.totalorder %s25_s15, 2  ;;  %p151_p2 = scmp.lt.s32.totalorder %s1144_s14, 3 }
   0x5   : > { %s1307_s15 = smov (%p27_p1, %s25_s15), 0  ;;  %p152_p3 = pnand %p891_p0, %p151_p2 }
   0x6   : > { %v895_v0 = vld [vmem:[%s1301_s1 + $0x10] sm:$0xff] (!%p152_p3)  ;;  %v896_v1 = vld [vmem:[%s1301_s1 + $0x18] sm:$0xff] (!%p152_p3)  ;;  %v921_v2 = vld [vmem:[%s1301_s1 + $0x20] sm:$0xff] (!%p152_p3)  ;;  %p179_p4 = scmp.lt.s32.totalorder (!%p152_p3), %s1136_s12, 1  ;;  %vm218_vm0 = vcmask (!%p152_p3), 130048   ;;  %vm791_vm1 = vcmask (!%p152_p3), 261120  }
   0x7   : > { %155 = sbr.rel (%p152_p3) target bundleno = 266 (0x10a), region = 32  ;;  %v1057_v3 = vpack.c.bf16 (!%p152_p3), %v896_v1, %v895_v0  ;;  %v922_v4 = vld [vmem:[%s1301_s1 + $0x28] sm:$0xff] (!%p152_p3)  ;;  %v205_v5 = vld [vmem:[%s1301_s1] sm:$0xff] (!%p152_p3)  ;;  %v939_v9 = vld [vmem:[%s1301_s1 + $0x30] sm:$0xff] (!%p152_p3) }
   0x8   : > { %v206_v6 = vld [vmem:[%s1301_s1 + $0x8] sm:$0xff] (!%p152_p3)  ;;  %v1065_v7 = vpack.c.bf16 (!%p152_p3), %v922_v4, %v921_v2  ;;  %v940_v10 = vld [vmem:[%s1301_s1 + $0x38] sm:$0xff] (!%p152_p3)  ;;  %v949_v32 = vld [vmem:[%s1302_s2] ss:$0 sm:$0xff] (!%p152_p3) }
   0x9   : > { %v1061_v8 = vpack.c.bf16 (!%p152_p3), %v206_v6, %v205_v5  ;;  %1058 = vmatprep.subr.bf16.mxu1 (!%p152_p3), %v1057_v3  ;;  %v1069_v11 = vpack.c.bf16 (!%p152_p3), %v940_v10, %v939_v9 }
   0xa   : > { %1066 = vmatprep.subr.bf16.mxu0 (!%p152_p3), %v1065_v7  ;;  %1060 = vmatpush3.bf16.msra.mxu1 (!%p152_p3), %v1057_v3 }
   0xb   : > { %1068 = vmatpush3.bf16.msra.mxu0 (!%p152_p3), %v1065_v7  ;;  %1062 = vmatprep.subr.bf16.mxu1 (!%p152_p3), %v1061_v8 }
   0xc   : > { %1070 = vmatprep.subr.bf16.mxu0 (!%p152_p3), %v1069_v11 }
   0xe   : > { %s1309_s12 = smov (!%p179_p4, %s1136_s12), 1 }
   0xf   : > { %s1097_s5 = smul.u32 144, %s1309_s12  ;;  %s952_s9 = sshll.u32 %s1309_s12, 6 }
  0x10   : > { %s1273_s18 = scalar_lea.vmem %s1303_s3, %s952_s9 }
  0x11   : > { %s1214_s8 = scalar_lea.vmem %s1300_s0, %s1097_s5 }
  0x12   : > { %v207_v12 = vld [vmem:[%s1214_s8 + $0x1] sm:$0xff]  ;;  %v913_v13 = vld [vmem:[%s1214_s8 + $0x10] sm:$0xff] }
  0x13   : > { %v208_v14 = vld [vmem:[%s1214_s8 + $0x11] sm:$0xff]  ;;  %997 = vmatprep.mubr.msk.f32.mxu1 %vm218_vm0, %v207_v12  ;;  %1029 = vmatprep.mubr.msk.f32.mxu0 %vm218_vm0, %v913_v13  ;;  %v914_v15 = vld [vmem:[%s1214_s8 + $0x20] sm:$0xff] }
  0x14   : > { %v209_v16 = vld [vmem:[%s1214_s8 + $0x21] sm:$0xff]  ;;  %v915_v17 = vld [vmem:[%s1214_s8 + $0x30] sm:$0xff]  ;;  %998 = vmatmul.mubr.msk.f32.vlgmr.msra.gmra.mrb[0].mxu1 %vm218_vm0, %v208_v14  ;;  %1030 = vmatmul.mubr.msk.f32.vlgmr.msra.gmra.mrb[0].mxu0 %vm218_vm0, %v914_v15 }
  0x15   : > { %1064 = vmatpush3.bf16.msra.mxu1 %v1061_v8  ;;  %1072 = vmatpush3.bf16.msra.mxu0 %v1069_v11  ;;  %v210_v18 = vld [vmem:[%s1214_s8 + $0x31] sm:$0xff]  ;;  %v916_v19 = vld [vmem:[%s1214_s8 + $0x40] sm:$0xff] }
  0x16   : > { %1000 = vmatprep.mubr.msk.f32.mxu1 %vm218_vm0, %v209_v16  ;;  %1032 = vmatprep.mubr.msk.f32.mxu0 %vm218_vm0, %v915_v17  ;;  %v211_v20 = vld [vmem:[%s1214_s8 + $0x41] sm:$0xff]  ;;  %v917_v21 = vld [vmem:[%s1214_s8 + $0x50] sm:$0xff] }
  0x17   : > { %v212_v22 = vld [vmem:[%s1214_s8 + $0x51] sm:$0xff]  ;;  %v918_v23 = vld [vmem:[%s1214_s8 + $0x60] sm:$0xff] }
  0x18   : > { %1001 = vmatmul.mubr.msk.f32.gmra.mrb[2].mxu1 %vm218_vm0, %v210_v18  ;;  %1033 = vmatmul.mubr.msk.f32.gmra.mrb[2].mxu0 %vm218_vm0, %v916_v19  ;;  %v213_v24 = vld [vmem:[%s1214_s8 + $0x61] sm:$0xff]  ;;  %v919_v25 = vld [vmem:[%s1214_s8 + $0x70] sm:$0xff] }
  0x19   : > { %1003 = vmatprep.mubr.msk.f32.mxu1 %vm218_vm0, %v211_v20  ;;  %1035 = vmatprep.mubr.msk.f32.mxu0 %vm218_vm0, %v917_v21  ;;  %v214_v26 = vld [vmem:[%s1214_s8 + $0x71] sm:$0xff]  ;;  %v920_v27 = vld [vmem:[%s1214_s8 + $0x80] sm:$0xff] }
  0x1a   : > { %v197_v28 = vld [vmem:[%s1214_s8] sm:$0xff] }
  0x1b   : > { %v938_v29 = vld [vmem:[%s1214_s8 + $0x81] sm:$0xff] }
  0x1c   : > { %1004 = vmatmul.mubr.msk.f32.gmra.mrb[4].mxu1 %vm218_vm0, %v212_v22  ;;  %1036 = vmatmul.mubr.msk.f32.gmra.mrb[4].mxu0 %vm218_vm0, %v918_v23 }
  0x1d   : > { %1006 = vmatprep.mubr.msk.f32.mxu1 %vm218_vm0, %v213_v24  ;;  %1038 = vmatprep.mubr.msk.f32.mxu0 %vm218_vm0, %v919_v25 }
  0x20   : > { %1007 = vmatmul.mubr.msk.f32.gmra.mrb[6].mxu1 %vm218_vm0, %v214_v26  ;;  %1039 = vmatmul.mubr.msk.f32.gmra.mrb[6].mxu0 %vm218_vm0, %v920_v27 }
  0x21   : > { %1013 = vmatprep.mubr.msk.f32.mxu1 %vm218_vm0, %v197_v28  ;;  %1045 = vmatprep.mubr.msk.f32.mxu0 %vm218_vm0, %v208_v14 }
  0x24   : > { %1014 = vmatmul.mubr.msk.f32.vlgmr.msra.gmra.mrb[0].mxu1 %vm218_vm0, %v913_v13  ;;  %1046 = vmatmul.mubr.msk.f32.vlgmr.msra.gmra.mrb[0].mxu0 %vm218_vm0, %v209_v16 }
  0x25   : > { %1016 = vmatprep.mubr.msk.f32.mxu1 %vm218_vm0, %v914_v15  ;;  %1048 = vmatprep.mubr.msk.f32.mxu0 %vm218_vm0, %v210_v18 }
  0x28   : > { %1017 = vmatmul.mubr.msk.f32.gmra.mrb[2].mxu1 %vm218_vm0, %v915_v17  ;;  %1049 = vmatmul.mubr.msk.f32.gmra.mrb[2].mxu0 %vm218_vm0, %v211_v20 }
  0x29   : > { %1019 = vmatprep.mubr.msk.f32.mxu1 %vm218_vm0, %v916_v19  ;;  %1051 = vmatprep.mubr.msk.f32.mxu0 %vm218_vm0, %v212_v22 }
  0x2c   : > { %1020 = vmatmul.mubr.msk.f32.gmra.mrb[4].mxu1 %vm218_vm0, %v917_v21  ;;  %1052 = vmatmul.mubr.msk.f32.gmra.mrb[4].mxu0 %vm218_vm0, %v213_v24 }
  0x2d   : > { %1022 = vmatprep.mubr.msk.f32.mxu1 %vm218_vm0, %v918_v23  ;;  %1054 = vmatprep.mubr.msk.f32.mxu0 %vm218_vm0, %v214_v26 }
  0x30   : > { %1023 = vmatmul.mubr.msk.f32.gmra.mrb[6].mxu1 %vm218_vm0, %v919_v25  ;;  %1055 = vmatmul.mubr.msk.f32.gmra.mrb[6].mxu0 %vm218_vm0, %v938_v29 }
  0xf7   : > { %v1015_v30 = vpop.f32.mrb[0].mxu1  ;;  %v1047_v31 = vpop.f32.mrb[0].mxu0 }
  0xf8   : > { %v1073_v33 = vadd.f32 %v1047_v31, %v1015_v30  ;;  %v438_v34 = vpop.f32.mrb[1].mxu1  ;;  %v729_v35 = vpop.f32.mrb[1].mxu0 }
  0xf9   : > { %v1074_v36 = vadd.f32 %v729_v35, %v438_v34 }
  0xfa   : > { %v784_v37 = vadd.f32 %v1073_v33, %v949_v32 }
  0xfb   : > { %v783_v38 = vadd.f32 %v1074_v36, %v949_v32  ;;  %v1018_v39 = vpop.f32.mrb[2].mxu1  ;;  %v1050_v40 = vpop.f32.mrb[2].mxu0 }
  0xfc   : > { %793 = vst.msk [vmem:[%s1273_s18 + $0x8] sm:$0xff] %vm791_vm1, %v784_v37  ;;  %v1075_v41 = vadd.f32 %v1050_v40, %v1018_v39  ;;  %v448_v42 = vpop.f32.mrb[3].mxu1  ;;  %v739_v43 = vpop.f32.mrb[3].mxu0 }
  0xfd   : > { %792 = vst.msk [vmem:[%s1273_s18] sm:$0xff] %vm791_vm1, %v783_v38  ;;  %v1076_v44 = vadd.f32 %v739_v43, %v448_v42 }
  0xfe   : > { %v786_v45 = vadd.f32 %v1075_v41, %v949_v32 }
  0xff   : > { %v785_v46 = vadd.f32 %v1076_v44, %v949_v32  ;;  %v1021_v47 = vpop.f32.mrb[4].mxu1  ;;  %v1053_v48 = vpop.f32.mrb[4].mxu0 }
 0x100   : > { %795 = vst.msk [vmem:[%s1273_s18 + $0x18] sm:$0xff] %vm791_vm1, %v786_v45  ;;  %v1077_v49 = vadd.f32 %v1053_v48, %v1021_v47  ;;  %v458_v50 = vpop.f32.mrb[5].mxu1  ;;  %v749_v51 = vpop.f32.mrb[5].mxu0 }
 0x101   : > { %794 = vst.msk [vmem:[%s1273_s18 + $0x10] sm:$0xff] %vm791_vm1, %v785_v46  ;;  %v1078_v52 = vadd.f32 %v749_v51, %v458_v50 }
 0x102   : > { %v788_v53 = vadd.f32 %v1077_v49, %v949_v32 }
 0x103   : > { %v787_v54 = vadd.f32 %v1078_v52, %v949_v32  ;;  %v1024_v55 = vpop.f32.mrb[6].mxu1  ;;  %v1056_v56 = vpop.f32.mrb[6].mxu0 }
 0x104   : > { %797 = vst.msk [vmem:[%s1273_s18 + $0x28] sm:$0xff] %vm791_vm1, %v788_v53  ;;  %v1079_v57 = vadd.f32 %v1056_v56, %v1024_v55  ;;  %v468_v58 = vpop.f32.mrb[7].mxu1  ;;  %v759_v59 = vpop.f32.mrb[7].mxu0 }
 0x105   : > { %796 = vst.msk [vmem:[%s1273_s18 + $0x20] sm:$0xff] %vm791_vm1, %v787_v54  ;;  %v1080_v60 = vadd.f32 %v759_v59, %v468_v58 }
 0x106   : > { %v790_v61 = vadd.f32 %v1079_v57, %v949_v32 }
 0x107   : > { %v789_v62 = vadd.f32 %v1080_v60, %v949_v32 }
 0x108   : > { %799 = vst.msk [vmem:[%s1273_s18 + $0x38] sm:$0xff] %vm791_vm1, %v790_v61 }
 0x109   : > { %798 = vst.msk [vmem:[%s1273_s18 + $0x30] sm:$0xff] %vm791_vm1, %v789_v62 }
 0x10a PF: > { %s13_s14 = sadd.s32 1, %s1144_s14   ;;  %s1304_s12 = smov %s1140_s13 }
 0x10b   : > { %p10_p5 = scmp.ge.s32.totalorder %s13_s14, 4   ;;  %s1305_s13 = smov %s1307_s15 }
 0x10d   :  { %12 = sbr.rel (!%p10_p5) target bundleno = 2 (0x2), region = 67 }

</bundles_post_ra>
